<compile_context>
chip_gen: v7x
topology: tpu7x:2x2x1
jax: 0.10.0
libtpu: 0.0.40
codegen_flags: <defaults>
</compile_context>

<pallas_src>
import jax
import jax.numpy as jnp
import numpy as np
from jax.experimental import pallas as pl
from jax.experimental.pallas import tpu as pltpu


def _dma_copy_kernel(p_ref, o_ref, sem):
    # forward(): return self.params  ->  one direct HBM->HBM DMA of the whole
    # parameter buffer (no VMEM staging, no tiling, no padding).
    cp = pltpu.make_async_copy(p_ref, o_ref, sem)
    cp.start()
    cp.wait()


def _pallas_copy(params: jax.Array) -> jax.Array:
    """Materialize a fresh copy of `params` with a single HBM->HBM DMA."""
    return pl.pallas_call(
        _dma_copy_kernel,
        out_shape=jax.ShapeDtypeStruct(params.shape, params.dtype),
        in_specs=[pl.BlockSpec(memory_space=pl.ANY)],
        out_specs=pl.BlockSpec(memory_space=pl.ANY),
        scratch_shapes=[pltpu.SemaphoreType.DMA(())],
    )(params)


def parameter_vector_forward(params: jax.Array, data=None, *, materialize: bool = False) -> jax.Array:
    """Pallas equivalent of ParameterVector.forward(): returns params (data ignored).

    Fast path (default): pure identity — no HBM traffic, no kernel launch.
    materialize=True: single HBM->HBM DMA producing an explicit fresh buffer.
    """
    del data  # ignored by the original module's forward()
    if not materialize:
        return params
    return _pallas_copy(params)


def init_parameter_vector(dim_x: int, dim_y: int = 1, init_value=None) -> jax.Array:
    """Mirrors ParameterVector.init_params()."""
    if init_value is None:
        assert dim_x is not None
        init_value = (1.0 / dim_x) * np.ones((dim_x, dim_y), dtype=np.float32)
    else:
        init_value = np.asarray(init_value, dtype=np.float32)
    return jnp.asarray(init_value, dtype=jnp.float32)


# TODO(synk): update_params/reset_params/get_parameters/is_finite are host-side
# parameter management (optimizer plumbing), not forward-pass compute; no kernel.

if __name__ == "__main__":
    # --- default module configuration: (dim_x, dim_y) = (8, 1) ----------------
    dim_x, dim_y = 8, 1
    key = jax.random.PRNGKey(0)  # only used for the (ignored) forward input
    data = jax.random.normal(key, (dim_x, dim_y), dtype=jnp.float32)

    params = init_parameter_vector(dim_x, dim_y, init_value=None)
    expected = np.full((dim_x, dim_y), 1.0 / dim_x, dtype=np.float32)

    # Zero-copy identity path (the semantics of forward()).
    out_fast = parameter_vector_forward(params, data)
    out_fast = jax.block_until_ready(out_fast)
    np.testing.assert_allclose(np.asarray(out_fast), expected, rtol=0, atol=0)
    assert out_fast.dtype == jnp.float32 and out_fast.shape == (dim_x, dim_y)

    # Materialized copy path: single HBM->HBM DMA, no padding / reshaping.
    out_copy = parameter_vector_forward(params, data, materialize=True)
    out_copy = jax.block_until_ready(out_copy)
    np.testing.assert_allclose(np.asarray(out_copy), expected, rtol=0, atol=0)
    assert out_copy.dtype == jnp.float32 and out_copy.shape == (dim_x, dim_y)

    # --- a non-aligned larger shape: DMA path needs no (8,128) alignment ------
    dx2, dy2 = 1032, 5
    params2 = init_parameter_vector(dx2, dy2, init_value=None)
    out2 = parameter_vector_forward(params2, materialize=True)
    out2 = jax.block_until_ready(out2)
    np.testing.assert_allclose(
        np.asarray(out2),
        np.full((dx2, dy2), 1.0 / dx2, dtype=np.float32),
        rtol=0, atol=0,
    )
    assert out2.shape == (dx2, dy2) and out2.dtype == jnp.float32

    print("KERNEL_OK")
</pallas_src>

<mosaic_0001>
module attributes {stable_mosaic.version = 11 : i64} {
  func.func @_dma_copy_kernel(%arg0: memref<8x1xf32, #tpu.memory_space<any>>, %arg1: memref<8x1xf32, #tpu.memory_space<any>>, %arg2: memref<!tpu.dma_semaphore, #tpu.memory_space<semaphore_mem>>) attributes {dimension_semantics = [], scalar_prefetch = 0 : i64, scratch_operands = 1 : i64, tpu.core_type = #tpu.core_type<tc>} {
    tpu.enqueue_dma source(%arg0 : memref<8x1xf32, #tpu.memory_space<any>>) target(%arg1 : memref<8x1xf32, #tpu.memory_space<any>>) target_semaphore(%arg2 : memref<!tpu.dma_semaphore, #tpu.memory_space<semaphore_mem>>)
    tpu.wait_dma2 semaphore(%arg2 : memref<!tpu.dma_semaphore, #tpu.memory_space<semaphore_mem>>) src(%arg0 : memref<8x1xf32, #tpu.memory_space<any>>) dst(%arg1 : memref<8x1xf32, #tpu.memory_space<any>>)
    return
  }
}

</mosaic_0001>

<bundles_post_ra>
// kernel: tpu_custom_call.1
= control target key start
LH: loop header
LB: loop body
LE: loop exit
PB: predicated region body
PF: predicated region fallthrough
CT: control target
= control target key end

     0   :  { %s84_s0 = inlined_call_operand.vmem [shape: f32[8,1], index: 0, kind: input, shape index: {}]   ;;  %s85_s1 = inlined_call_operand.vmem [shape: f32[8,1], index: 1, kind: output, shape index: {}]  }
   0x1   :  { %v38_v0 = vld [vmem:[%s84_s0] sm:$0xff] }
   0x2   :  { %39 = vst [vmem:[%s85_s1] sm:$0xff] %v38_v0 }
   0x3   :  { %47 = vsyncadd [#allocation2], 128 }
   0x4   :  { %66 = dma.done.wait [#allocation2], 128 }
   0x5   :  { %67 = vsyncadd [#allocation2], 4294967168 }
   0x6   :  { %51 = vsyncmov [#allocation2] }
   0x9   :  { %s52_s10 = vpop.sfrf %51 }
   0xa   :  { %p65_p0 = scmp.ne.s32.totalorder %s52_s10, 0 }
   0xc   :  { %56 = shalt.err (%p65_p0)  }

</bundles_post_ra>
